<compile_context>
chip_gen: v5e
topology: v5e:2x2
jax: 0.10.0
libtpu: 0.0.40
codegen_flags: <defaults>
</compile_context>

<pallas_src>
import functools

import jax
import jax.numpy as jnp
from jax import lax
from jax.experimental import pallas as pl
from jax.experimental.pallas import tpu as pltpu

LANES = 128
SUBLANES = 8
CHUNK_ROWS = 512                    # 512*128*4B = 256 KiB f32 temp per chunk
MAX_BLOCK_BYTES = 8 * 1024 * 1024   # ~8 MiB per operand per grid step
SINGLE_MAX_ROWS = 2048              # <=1 MiB f32/operand -> single-block path
NCORES = 2                          # leading 'parallel' axis (v7x megacore)
VMEM_LIMIT = 48 * 1024 * 1024       # explicit scoped-VMEM budget (v7x-safe)


def _cdiv(a, b):
    return -(-a // b)


def _round_up(x, m):
    return _cdiv(x, m) * m


# ----------------------------------------------------------------------------
# Single-block kernel: whole problem in one block; fold the cross-lane reduce
# and the /N into the kernel, emit a (1, 1) scalar.
# ----------------------------------------------------------------------------
def _ssd_single_kernel(x_ref, t_ref, o_ref, *, inv_n):
    d = x_ref[...].astype(jnp.float32) - t_ref[...].astype(jnp.float32)
    sq = d * d
    ssd = jnp.sum(sq, axis=0, keepdims=True)        # (1, 128)  sublane reduce
    ssd = jnp.sum(ssd, axis=1, keepdims=True)       # (1, 1)    lane reduce
    o_ref[...] = ssd * inv_n


def _ssd_single(x2d, t2d, n_elem):
    rows = x2d.shape[0]
    kernel = functools.partial(_ssd_single_kernel, inv_n=1.0 / n_elem)
    cost = pl.CostEstimate(
        flops=3 * n_elem,
        transcendentals=0,
        bytes_accessed=n_elem * (x2d.dtype.itemsize + t2d.dtype.itemsize) + 4,
    )
    return pl.pallas_call(
        kernel,
        out_shape=jax.ShapeDtypeStruct((1, 1), jnp.float32),
        grid_spec=pltpu.PrefetchScalarGridSpec(
            num_scalar_prefetch=0,
            grid=(1,),
            in_specs=[
                pl.BlockSpec((rows, LANES), lambda i: (0, 0)),
                pl.BlockSpec((rows, LANES), lambda i: (0, 0)),
            ],
            out_specs=pl.BlockSpec((1, 1), lambda i: (0, 0)),
        ),
        compiler_params=pltpu.CompilerParams(
            dimension_semantics=("arbitrary",),
            vmem_limit_bytes=VMEM_LIMIT,
        ),
        cost_estimate=cost,
    )(x2d, t2d)


# ----------------------------------------------------------------------------
# Multi-block kernel: grid = (NCORES 'parallel', steps 'arbitrary').  Each core
# accumulates its own lane-dense (1, 8, 128) partial slab directly in o_ref
# (no scratch).  Ragged / virtual tail rows are masked in-kernel, so the
# wrapper never pads to a block multiple.
# ----------------------------------------------------------------------------
def _ssd_accum_kernel(x_ref, t_ref, o_ref, *, block_rows, steps, valid_rows):
    c = pl.program_id(0)
    i = pl.program_id(1)

    @pl.when(i == 0)
    def _():
        o_ref[...] = jnp.zeros_like(o_ref)

    # Logical (unclamped) first row of this block.
    block_start = (c * steps + i) * block_rows
    # Hoisted iota (same every chunk; only the scalar offset changes).
    row_iota = lax.broadcasted_iota(jnp.int32, (CHUNK_ROWS, LANES), 0)
    nchunks = block_rows // CHUNK_ROWS

    def body(k, acc):
        r0 = pl.multiple_of(k * CHUNK_ROWS, CHUNK_ROWS)
        xs = x_ref[pl.ds(r0, CHUNK_ROWS), :].astype(jnp.float32)
        ts = t_ref[pl.ds(r0, CHUNK_ROWS), :].astype(jnp.float32)
        d = xs - ts
        sq = d * d
        grow = block_start + r0 + row_iota            # global row index
        sq = jnp.where(grow < valid_rows, sq, 0.0)    # mask ragged/virtual rows
        # Fold into an (8, 128) vreg-shaped accumulator: pure VPU adds.
        return acc + jnp.sum(sq.reshape(-1, SUBLANES, LANES), axis=0)

    acc = lax.fori_loop(0, nchunks, body,
                        jnp.zeros((SUBLANES, LANES), jnp.float32))
    o_ref[...] += acc[None]


def _ssd_multi(x2d, t2d, rows, block_rows, steps, n_elem):
    actual_blocks = _cdiv(rows, block_rows)

    def in_map(c, i):
        # Clamp so the DMA base never points past the array; the (rare) fully
        # virtual block re-reads the last real block and is fully masked.
        return (jnp.minimum(c * steps + i, actual_blocks - 1), 0)

    kernel = functools.partial(
        _ssd_accum_kernel, block_rows=block_rows, steps=steps, valid_rows=rows)
    cost = pl.CostEstimate(
        flops=3 * n_elem,
        transcendentals=0,
        bytes_accessed=(n_elem * (x2d.dtype.itemsize + t2d.dtype.itemsize)
                        + NCORES * SUBLANES * LANES * 4),
    )
    return pl.pallas_call(
        kernel,
        out_shape=jax.ShapeDtypeStruct((NCORES, SUBLANES, LANES), jnp.float32),
        grid_spec=pltpu.PrefetchScalarGridSpec(
            num_scalar_prefetch=0,
            grid=(NCORES, steps),
            in_specs=[
                pl.BlockSpec((block_rows, LANES), in_map),
                pl.BlockSpec((block_rows, LANES), in_map),
            ],
            out_specs=pl.BlockSpec((1, SUBLANES, LANES), lambda c, i: (c, 0, 0)),
        ),
        compiler_params=pltpu.CompilerParams(
            dimension_semantics=("parallel", "arbitrary"),
            vmem_limit_bytes=VMEM_LIMIT,
        ),
        cost_estimate=cost,
    )(x2d, t2d)


# ----------------------------------------------------------------------------
# Wrapper: ContentLoss.forward equivalent.  Returns (in_data, mse_loss).
# ----------------------------------------------------------------------------
@jax.jit
def content_loss_forward(in_data, target):
    assert in_data.shape == target.shape, "input/target shape mismatch"
    n_elem = in_data.size

    flat_x = in_data.reshape(-1)
    flat_t = target.reshape(-1)

    rows0 = _cdiv(n_elem, LANES)

    if rows0 <= SINGLE_MAX_ROWS:
        # Tiny path (the module's actual workload): pad to an (8,128) tile
        # multiple (a no-op for 2*4*16*16 = 2048 = 16*128) and do one block.
        padded = _round_up(n_elem, SUBLANES * LANES)
        if padded != n_elem:
            flat_x = jnp.pad(flat_x, (0, padded - n_elem))
            flat_t = jnp.pad(flat_t, (0, padded - n_elem))
        rows = padded // LANES
        x2d = flat_x.reshape(rows, LANES)
        t2d = flat_t.reshape(rows, LANES)
        loss = _ssd_single(x2d, t2d, n_elem)[0, 0]
        return in_data, loss

    # Large path: pad only to a 128-lane multiple (usually a no-op); the ragged
    # last block is handled by in-kernel masking, never by padding.
    padded = _round_up(n_elem, LANES)
    if padded != n_elem:
        flat_x = jnp.pad(flat_x, (0, padded - n_elem))
        flat_t = jnp.pad(flat_t, (0, padded - n_elem))
    rows = padded // LANES
    x2d = flat_x.reshape(rows, LANES)
    t2d = flat_t.reshape(rows, LANES)

    itemsize = max(jnp.dtype(in_data.dtype).itemsize,
                   jnp.dtype(target.dtype).itemsize)
    # Multiple of CHUNK_ROWS (512) => multiple of every packed-sublane tile.
    max_block_rows = (MAX_BLOCK_BYTES // (LANES * itemsize)
                      // CHUNK_ROWS) * CHUNK_ROWS
    steps = _cdiv(rows, NCORES * max_block_rows)
    block_rows = _round_up(_cdiv(rows, NCORES * steps), CHUNK_ROWS)

    partials = _ssd_multi(x2d, t2d, rows, block_rows, steps, n_elem)
    loss = jnp.sum(partials) / jnp.float32(n_elem)
    return in_data, loss


if __name__ == "__main__":
    key = jax.random.PRNGKey(0)
    k1, k2, k3, k4 = jax.random.split(key, 4)

    # 1) The module's actual small NCHW workload (single-block kernel path).
    shape = (2, 4, 16, 16)
    in_data = jax.random.normal(k1, shape, dtype=jnp.float32)
    target = jax.random.normal(k2, shape, dtype=jnp.float32)
    out, loss = content_loss_forward(in_data, target)
    out = jax.block_until_ready(out)
    loss = jax.block_until_ready(loss)
    ref_loss = jnp.mean((in_data - target) ** 2)
    assert jnp.allclose(loss, ref_loss, rtol=1e-6, atol=1e-6), (loss, ref_loss)
    assert jnp.array_equal(out, in_data), "forward must return input unchanged"

    # 2) Larger, lane-unaligned workload: exercises the multi-block megacore
    #    path, the ragged-tail in-kernel masking, and the two-core partials.
    shape2 = (4, 100003)
    x2 = jax.random.normal(k3, shape2, dtype=jnp.float32)
    t2 = jax.random.normal(k4, shape2, dtype=jnp.float32)
    out2, loss2 = content_loss_forward(x2, t2)
    out2 = jax.block_until_ready(out2)
    loss2 = jax.block_until_ready(loss2)
    ref_loss2 = jnp.mean((x2 - t2) ** 2)
    assert jnp.allclose(loss2, ref_loss2, rtol=2e-5, atol=1e-6), (loss2, ref_loss2)
    assert jnp.array_equal(out2, x2), "forward must return input unchanged"

    print("KERNEL_OK")
</pallas_src>

<mosaic_0001>
module attributes {stable_mosaic.version = 11 : i64} {
  func.func @_ssd_single_kernel(%arg0: i32, %arg1: memref<16x128xf32, #tpu.memory_space<vmem>>, %arg2: memref<16x128xf32, #tpu.memory_space<vmem>>, %arg3: memref<1x1xf32, #tpu.memory_space<vmem>>) attributes {dimension_semantics = [#tpu.dimension_semantics<arbitrary>], iteration_bounds = array<i64: 1>, scalar_prefetch = 0 : i64, scratch_operands = 0 : i64, tpu.core_type = #tpu.core_type<tc>, window_params = [{pipeline_mode = #tpu.pipeline_mode<synchronous>, transform_indices = @transform_0, window_bounds = array<i64: 16, 128>}, {pipeline_mode = #tpu.pipeline_mode<synchronous>, transform_indices = @transform_1, window_bounds = array<i64: 16, 128>}, {pipeline_mode = #tpu.pipeline_mode<synchronous>, transform_indices = @transform_2, window_bounds = array<i64: 1, 1>}]} {
    %c0 = arith.constant 0 : index
    %c0_0 = arith.constant 0 : index
    %0 = vector.load %arg1[%c0, %c0_0] : memref<16x128xf32, #tpu.memory_space<vmem>>, vector<16x128xf32>
    %c0_1 = arith.constant 0 : index
    %c0_2 = arith.constant 0 : index
    %1 = vector.load %arg2[%c0_1, %c0_2] : memref<16x128xf32, #tpu.memory_space<vmem>>, vector<16x128xf32>
    %2 = arith.subf %0, %1 : vector<16x128xf32>
    %3 = arith.mulf %2, %2 : vector<16x128xf32>
    %cst = arith.constant dense<0.000000e+00> : vector<128xf32>
    %4 = vector.multi_reduction <add>, %3, %cst [0] : vector<16x128xf32> to vector<128xf32>
    %5 = vector.shape_cast %4 : vector<128xf32> to vector<1x128xf32>
    %cst_3 = arith.constant dense<0.000000e+00> : vector<1xf32>
    %6 = vector.multi_reduction <add>, %5, %cst_3 [1] : vector<1x128xf32> to vector<1xf32>
    %7 = vector.shape_cast %6 : vector<1xf32> to vector<1x1xf32>
    %cst_4 = arith.constant 4.8828125E-4 : f32
    %8 = vector.broadcast %cst_4 : f32 to vector<1x1xf32>
    %9 = arith.mulf %7, %8 : vector<1x1xf32>
    %c0_5 = arith.constant 0 : index
    %c0_6 = arith.constant 0 : index
    %10 = vector.load %arg3[%c0_5, %c0_6] : memref<1x1xf32, #tpu.memory_space<vmem>>, vector<1x1xf32>
    tpu.vector_store %arg3[%c0_5, %c0_6], %9 {strides = array<i32>} : memref<1x1xf32, #tpu.memory_space<vmem>>, vector<1x1xf32>,
    return
  }
  func.func @transform_0(%arg0: i32) -> (i32, i32) {
    %c0_i32 = arith.constant 0 : i32
    %c0_i32_0 = arith.constant 0 : i32
    %c0_i32_1 = arith.constant 0 : i32
    return %c0_i32, %c0_i32_0 : i32, i32
  }
  func.func @transform_1(%arg0: i32) -> (i32, i32) {
    %c0_i32 = arith.constant 0 : i32
    %c0_i32_0 = arith.constant 0 : i32
    %c0_i32_1 = arith.constant 0 : i32
    return %c0_i32, %c0_i32_0 : i32, i32
  }
  func.func @transform_2(%arg0: i32) -> (i32, i32) {
    %c0_i32 = arith.constant 0 : i32
    %c0_i32_0 = arith.constant 0 : i32
    %c0_i32_1 = arith.constant 0 : i32
    return %c0_i32, %c0_i32_0 : i32, i32
  }
}

</mosaic_0001>

<bundles_post_ra>
// kernel: content_loss_forward.1
= control target key start
LH: loop header
LB: loop body
LE: loop exit
PB: predicated region body
PF: predicated region fallthrough
CT: control target
= control target key end

     0   :  { %s106_s0 = inlined_call_operand.vmem [shape: f32[16,128], index: 0, kind: input, shape index: {}]   ;;  %s107_s1 = inlined_call_operand.vmem [shape: f32[16,128], index: 1, kind: input, shape index: {}]   ;;  %s108_s2 = inlined_call_operand.hbm [shape: f32[1,1], index: 2, kind: output, shape index: {}]  }
   0x1   :  { %v12_v0 = vld [vmem:[%s106_s0] sm:$0xff]  ;;  %v13_v1 = vld [vmem:[%s106_s0 + $0x8] sm:$0xff] }
   0x2   :  { %v14_v2 = vld [vmem:[%s107_s1] sm:$0xff]  ;;  %v15_v3 = vld [vmem:[%s107_s1 + $0x8] sm:$0xff] }
   0x3   :  { %v16_v4 = vsub.f32 %v12_v0, %v14_v2 }
   0x4   :  { %7 = vsyncpa [#allocation3], 0  ;;  %v17_v5 = vsub.f32 %v13_v1, %v15_v3  ;;  %s75_s0 = smov [#allocation2]   ;;  %s39_s20 = sshll.u32 %s108_s2, 4  ;;  %vm30_vm0 = vcmask 0   ;;  %s40_s20 = int_to_ptr.hbm [resolvable:$true] %s39_s20 }
   0x5   :  { %v18_v6 = vmul.f32 %v16_v4, %v16_v4  ;;  %s37_s17 = sshll.u32 %s75_s0, 4  ;;  %s38_s17 = int_to_ptr.vmem [resolvable:$true] %s37_s17 }
   0x6   :  { %v19_v7 = vmul.f32 %v17_v5, %v17_v5 }
   0x8   :  { %v20_v8 = vadd.f32 %v19_v7, %v18_v6 }
   0xa   :  { %v21_v9 = vrot.slane %v20_v8, 4 }
   0xc   :  { %v22_v10 = vadd.f32 %v21_v9, %v20_v8 }
   0xe   :  { %v23_v11 = vrot.slane %v22_v10, 2 }
  0x10   :  { %v24_v12 = vadd.f32 %v23_v11, %v22_v10 }
  0x12   :  { %v25_v13 = vrot.slane %v24_v12, 1 }
  0x14   :  { %v26_v14 = vadd.f32 %v25_v13, %v24_v12 }
  0x16   :  { %27 = vadd.xlane.f32.xlu0 %v26_v14 }
  0x89   :  { %v28_v15 = vpop.xlane.xlu0 %27 }
  0x8a   :  { %v29_v16 = vmul.f32 0.00048828125, %v28_v15 }
  0x8c   :  { %31 = vst.msk [vmem:[#allocation2] sm:$0x1] %vm30_vm0, %v29_v16 }
  0x8d   :  { %42 = dma.vmem_to_hbm [thread:$0]  %s38_s17, 16, %s40_s20, [#allocation3]  }
  0x8e   :  { %73 = dma.done.wait [#allocation3], 16  }
  0x8f   :  { %74 = vsyncadd [#allocation3], 4294967280 }
  0x90   :  { %47 = vsyncpa [#allocation3], 1 }

</bundles_post_ra>
